<compile_context>
chip_gen: v6e
topology: v6e:2x2x1
jax: 0.10.0
libtpu: 0.0.40
codegen_flags: <defaults>
</compile_context>

<pallas_src>
import functools

import jax
import jax.numpy as jnp
from jax.experimental import pallas as pl
from jax.experimental.pallas import tpu as pltpu


def _round_up(x, m):
    return ((x + m - 1) // m) * m


# -----------------------------------------------------------------------------
# Single-step kernel (matches the PyTorch module's forward exactly).
# Everything lives in SMEM: pai f32[D], a i32[1], td f32[1], out f32[1].
# -----------------------------------------------------------------------------
def actor_loss_single_kernel(pai_ref, a_ref, td_ref, o_ref):
    d = pai_ref.shape[0]
    # Clamp the action index so an out-of-range `a` cannot trigger an
    # unchecked OOB SMEM read (PyTorch would raise; here we clamp).
    a = jnp.maximum(jnp.minimum(a_ref[0], d - 1), 0)
    picked = pai_ref[a]                       # single scalar load (sld)
    # torch.mean over a scalar is the scalar itself.
    o_ref[0] = jnp.log(picked + 1.0) * td_ref[0]


def actor_loss(pai, a, td_error):
    """Exact equivalent of Actor_Loss.forward: pai f32[1, D], a int, td float."""
    pai_flat = jnp.asarray(pai, jnp.float32).reshape(-1)   # [1, D] -> [D]
    a_arr = jnp.asarray(a, jnp.int32).reshape((1,))
    td_arr = jnp.asarray(td_error, jnp.float32).reshape((1,))

    out = pl.pallas_call(
        actor_loss_single_kernel,
        out_shape=jax.ShapeDtypeStruct((1,), jnp.float32),
        in_specs=[
            pl.BlockSpec(memory_space=pltpu.MemorySpace.SMEM),  # pai (flattened)
            pl.BlockSpec(memory_space=pltpu.MemorySpace.SMEM),  # a
            pl.BlockSpec(memory_space=pltpu.MemorySpace.SMEM),  # td_error
        ],
        out_specs=pl.BlockSpec(memory_space=pltpu.MemorySpace.SMEM),
    )(pai_flat, a_arr, td_arr)
    return out[0]


# -----------------------------------------------------------------------------
# Batched / trajectory kernel: mean_b( log(pai[b, a[b]] + 1) * td[b] ).
# Lane-dense layout: pai transposed to [D, B] (D on sublanes, B on lanes),
# a/td as [1, B] rows.  1-D grid over B with lane-aligned tiles; per-lane
# partial sums accumulate in a VMEM [1, TB] scratch; scalar result in SMEM.
# -----------------------------------------------------------------------------
def actor_loss_batched_kernel(pai_ref, a_ref, td_ref, o_ref, acc_ref, *, inv_b):
    d, tb = pai_ref.shape
    step = pl.program_id(0)

    @pl.when(step == 0)
    def _():
        acc_ref[...] = jnp.zeros_like(acc_ref)

    a_row = a_ref[...]                                     # [1, TB] i32 (lane-dense)
    # Unrolled compare/select gather over the D sublane rows (D small, static).
    # Out-of-range / padded indices leave picked == 0.0.
    picked = jnp.zeros((1, tb), jnp.float32)
    for row in range(d):
        picked = jnp.where(a_row == row, pai_ref[pl.ds(row, 1), :], picked)
    # EUP log only on the gathered lane-dense [1, TB] row; padded lanes have
    # td == 0 so they contribute nothing.
    vals = jnp.log(picked + 1.0) * td_ref[...]             # [1, TB]
    acc_ref[...] += vals                                   # per-lane partial sums

    @pl.when(step == pl.num_programs(0) - 1)
    def _():
        # Single cross-lane reduce at the very end, scaled by the true 1/B.
        o_ref[0] = jnp.sum(acc_ref[...]) * inv_b


def actor_loss_batched(pai, a, td_error, *, tb_max=1024):
    """Amortized variant over a rollout: pai f32[B, D], a i32[B], td f32[B]."""
    pai = jnp.asarray(pai, jnp.float32)
    b, d = pai.shape
    a = jnp.asarray(a, jnp.int32).reshape(b)
    td = jnp.asarray(td_error, jnp.float32).reshape(b)

    # Lane-dense tiling over B: TB is a multiple of 128 (pad B up with zeros;
    # padded lanes have td == 0 and therefore contribute 0 to the sum).
    tb = min(tb_max, _round_up(b, 128))
    tb = _round_up(tb, 128)
    b_pad = _round_up(b, tb)
    pad = b_pad - b

    pai_t = pai.T                                          # [D, B]  (layout plumbing)
    if pad:
        pai_t = jnp.pad(pai_t, ((0, 0), (0, pad)))
        a = jnp.pad(a, (0, pad))
        td = jnp.pad(td, (0, pad))
    a_row = a.reshape(1, b_pad)
    td_row = td.reshape(1, b_pad)

    kernel = functools.partial(actor_loss_batched_kernel, inv_b=1.0 / b)

    out = pl.pallas_call(
        kernel,
        out_shape=jax.ShapeDtypeStruct((1,), jnp.float32),
        grid_spec=pltpu.PrefetchScalarGridSpec(
            num_scalar_prefetch=0,
            grid=(b_pad // tb,),
            in_specs=[
                pl.BlockSpec((d, tb), lambda i: (0, i)),   # pai^T  [D, TB]
                pl.BlockSpec((1, tb), lambda i: (0, i)),   # a      [1, TB]
                pl.BlockSpec((1, tb), lambda i: (0, i)),   # td     [1, TB]
            ],
            out_specs=pl.BlockSpec(memory_space=pltpu.MemorySpace.SMEM),
            scratch_shapes=[pltpu.VMEM((1, tb), jnp.float32)],
        ),
        compiler_params=pltpu.CompilerParams(
            dimension_semantics=("arbitrary",)),           # reduction over B tiles
    )(pai_t, a_row, td_row)
    return out[0]


if __name__ == "__main__":
    key = jax.random.PRNGKey(0)
    output_dim = 8  # small action space, consistent with pai: [1, output_dim]
    k1, k2, k3, k4 = jax.random.split(key, 4)

    # ---- single-step case (exact module semantics) ----
    logits = jax.random.normal(k1, (1, output_dim), dtype=jnp.float32)
    pai = jax.nn.softmax(logits, axis=-1)
    a = 3
    td_error = 0.7

    loss = actor_loss(pai, a, td_error)
    loss = jax.block_until_ready(loss)
    ref = jnp.mean(jnp.log(pai[0, a] + 1.0) * jnp.float32(td_error))
    assert jnp.allclose(loss, ref, atol=1e-6, rtol=1e-6), (loss, ref)

    # ---- batched / trajectory case, single tile (B <= 128) ----
    B1 = 16
    logits_b = jax.random.normal(k2, (B1, output_dim), dtype=jnp.float32)
    pai_b = jax.nn.softmax(logits_b, axis=-1)
    a_b = jax.random.randint(k3, (B1,), 0, output_dim, dtype=jnp.int32)
    td_b = jax.random.normal(k4, (B1,), dtype=jnp.float32)

    loss_b = actor_loss_batched(pai_b, a_b, td_b)
    loss_b = jax.block_until_ready(loss_b)
    ref_b = jnp.mean(jnp.log(pai_b[jnp.arange(B1), a_b] + 1.0) * td_b)
    assert jnp.allclose(loss_b, ref_b, atol=1e-5, rtol=1e-5), (loss_b, ref_b)

    # ---- batched case exercising the multi-step grid / accumulator path ----
    B2 = 300
    k5, k6, k7 = jax.random.split(k4, 3)
    logits_b2 = jax.random.normal(k5, (B2, output_dim), dtype=jnp.float32)
    pai_b2 = jax.nn.softmax(logits_b2, axis=-1)
    a_b2 = jax.random.randint(k6, (B2,), 0, output_dim, dtype=jnp.int32)
    td_b2 = jax.random.normal(k7, (B2,), dtype=jnp.float32)

    loss_b2 = actor_loss_batched(pai_b2, a_b2, td_b2, tb_max=128)  # grid of 3 steps
    loss_b2 = jax.block_until_ready(loss_b2)
    ref_b2 = jnp.mean(jnp.log(pai_b2[jnp.arange(B2), a_b2] + 1.0) * td_b2)
    assert jnp.allclose(loss_b2, ref_b2, atol=1e-5, rtol=1e-5), (loss_b2, ref_b2)

    print("KERNEL_OK")
</pallas_src>

<mosaic_0001>
module attributes {stable_mosaic.version = 11 : i64} {
  func.func @actor_loss_single_kernel(%arg0: memref<8xf32, #tpu.memory_space<smem>>, %arg1: memref<1xi32, #tpu.memory_space<smem>>, %arg2: memref<1xf32, #tpu.memory_space<smem>>, %arg3: memref<1xf32, #tpu.memory_space<smem>>) attributes {dimension_semantics = [], scalar_prefetch = 0 : i64, scratch_operands = 0 : i64, tpu.core_type = #tpu.core_type<tc>} {
    %c0 = arith.constant 0 : index
    %0 = memref.load %arg1[%c0] : memref<1xi32, #tpu.memory_space<smem>>
    %c7_i32 = arith.constant 7 : i32
    %1 = arith.minsi %0, %c7_i32 : i32
    %c0_i32 = arith.constant 0 : i32
    %2 = arith.maxsi %1, %c0_i32 : i32
    %3 = arith.index_cast %2 : i32 to index
    %4 = memref.load %arg0[%3] : memref<8xf32, #tpu.memory_space<smem>>
    %cst = arith.constant 1.000000e+00 : f32
    %5 = arith.addf %4, %cst : f32
    %6 = math.log %5 : f32
    %c0_0 = arith.constant 0 : index
    %7 = memref.load %arg2[%c0_0] : memref<1xf32, #tpu.memory_space<smem>>
    %8 = arith.mulf %6, %7 : f32
    %c0_1 = arith.constant 0 : index
    %9 = memref.load %arg3[%c0_1] : memref<1xf32, #tpu.memory_space<smem>>
    memref.store %8, %arg3[%c0_1] : memref<1xf32, #tpu.memory_space<smem>>
    return
  }
}

</mosaic_0001>

<bundles_post_ra>
// kernel: tpu_custom_call.1
= control target key start
LH: loop header
LB: loop body
LE: loop exit
PB: predicated region body
PF: predicated region fallthrough
CT: control target
= control target key end

     0   :  { %10 = vsyncpa [#allocation6], 0  ;;  %s136_s0 = inlined_call_operand.vmem [shape: f32[8], index: 0, kind: input, shape index: {}]   ;;  %s137_s1 = inlined_call_operand.<no memory space> [shape: s32[1], index: 1, kind: input, shape index: {}]   ;;  %s138_s2 = inlined_call_operand.<no memory space> [shape: f32[1], index: 2, kind: input, shape index: {}]   ;;  %s139_s3 = inlined_call_operand.hbm [shape: f32[1], index: 3, kind: output, shape index: {}]  }
   0x1   :  { %11 = vsyncpa [#allocation5], 0  ;;  %s18_s14 = sshll.u32 %s136_s0, 4  ;;  %s19_s14 = int_to_ptr.vmem [resolvable:$true] %s18_s14 }
   0x2   :  { %s72_s15 = scalar_lea.vmem %s19_s14, 16  ;;  %p77_p1 = scmp.lt.s32.totalorder %s19_s14, %s19_s14 }
   0x3   :  { %p73_p0 = scmp.ne.s32.totalorder %s19_s14, %s72_s15  ;;  %p78_p2 = scmp.lt.s32.totalorder %s72_s15, %s72_s15 }
   0x5   :  { %p79_p3 = por %p78_p2, %p77_p1 }
   0x7   :  { %p80_p4 = pnand %p79_p3, %p73_p0 }
   0x9   :  { %83 = shalt.err (!%p80_p4)
}
   0xa   :  { %s96_s16 = smov [#allocation4]  }
   0xb   :  { %21 = dma.vmem_to_smem %s19_s14, 16, %s96_s16, [#allocation6]  }
   0xc   :  { %92 = dma.done.wait [#allocation6], 16  }
   0xd   :  { %93 = vsyncadd [#allocation6], 4294967280 }
   0xe   :  { %29 = sfence }
   0xf   :  { %p31_p5 = scmp.lt.s32.totalorder %s137_s1, 7  ;;  %p59_p6 = scmp.gt.s32.totalorder %s137_s1, 0 }
  0x10   :  { %s97_s28 = smov [#allocation7]  }
  0x11   :  { %s141_s1 = smov (!%p31_p5, %s137_s1), 7 }
  0x12   :  { %s143_s1 = smov (!%p59_p6, %s141_s1), 0 }
  0x13   :  { %s35_s22 = sld [smem:[#allocation4 + %s143_s1]] }
  0x19   :  { %s36_s23 = sadd.f32 1.0, %s35_s22 }
  0x1b   :  { %v37_v0 = vstv %s36_s23 }
  0x1c   :  { %70 = vlog2.f32 %v37_v0 }
  0x29   :  { %v71_v1 = vpop.eup %70 }
  0x2a   :  { %v39_v2 = vmul.f32 0.6931472, %v71_v1 }
  0x2c   :  { %66 = vpush %v39_v2 }
  0x5d   :  { %s67_s24 = spop %66 }
  0x5e   :  { %s42_s27 = smul.f32 %s67_s24, %s138_s2 }
  0x60   :  { %44 = sst [smem:[#allocation7]] %s42_s27 }
  0x61   :  { %52 = dma.smem_to_hbm %s97_s28, 16, %s139_s3, [#allocation5]  }
  0x62   :  { %94 = dma.done.wait [#allocation5], 16  }
  0x63   :  { %95 = vsyncadd [#allocation5], 4294967280 }
  0x64   :  { %56 = sfence }
  0x65   :  { %57 = vsyncpa [#allocation5], 1 }
  0x66   :  { %58 = vsyncpa [#allocation6], 1 }

</bundles_post_ra>
